<compile_context>
chip_gen: v5e
topology: v5e:2x2
jax: 0.10.0
libtpu: 0.0.40
codegen_flags: <defaults>
</compile_context>

<pallas_src>
import jax
import jax.numpy as jnp
import numpy as np
from jax.experimental import pallas as pl
from jax.experimental.pallas import tpu as pltpu

LEAKY_SLOPE = 0.2
BN_EPS = 0.8          # nn.BatchNorm2d(out_channels, 0.8) -> eps=0.8
KH = KW = 3
STRIDE = 2
PAD = 1


def down_kernel(patch_ref, w_ref, bias_ref, out_ref):
    # Conv as an im2col matmul on the MXU: (Cout, K) @ (K, tm) -> (Cout, tm).
    acc = jnp.dot(w_ref[...], patch_ref[...], preferred_element_type=jnp.float32)
    y = acc + bias_ref[...]                     # fused conv-bias + BatchNorm
    y = jnp.where(y > 0, y, LEAKY_SLOPE * y)    # LeakyReLU(0.2)
    # TODO(synk): training-mode BatchNorm (batch statistics) and stochastic
    # Dropout2d(0.5) are not implemented; this matches eval-mode forward where
    # Dropout2d is the identity.
    out_ref[...] = y.astype(out_ref.dtype)


def _im2col_t(x_nchw, dtype):
    """NCHW -> (C*KH*KW, N*Ho*Wo) patches: K-major rows, M on the lane axis."""
    n, c, h, w = x_nchw.shape
    ho = (h + 2 * PAD - KH) // STRIDE + 1
    wo = (w + 2 * PAD - KW) // STRIDE + 1
    xp = jnp.pad(x_nchw.astype(dtype), ((0, 0), (0, 0), (PAD, PAD), (PAD, PAD)))
    taps = []
    for i in range(KH):
        for j in range(KW):
            taps.append(xp[:, :, i:i + STRIDE * ho:STRIDE, j:j + STRIDE * wo:STRIDE])
    # (KH*KW, N, C, Ho, Wo) -> (C, KH, KW, N, Ho, Wo) -> (K, M)
    p = jnp.stack(taps, axis=0).reshape(KH, KW, n, c, ho, wo)
    p = p.transpose(3, 0, 1, 2, 4, 5).reshape(c * KH * KW, n * ho * wo)
    return p, ho, wo


def down_forward(x_nchw, params, *, tm=512):
    """Pallas implementation of Down.forward (eval semantics)."""
    w, b, gamma, beta, run_mean, run_var = params
    n, cin, h, wd = x_nchw.shape
    cout = w.shape[0]

    # TODO(synk): fuse patch construction into the kernel (manual haloed DMA of
    # the raw input) to avoid materializing the 9x-expanded im2col buffer in HBM.
    patches_t, ho, wo = _im2col_t(x_nchw, jnp.bfloat16)
    K, M = patches_t.shape

    # Lane tile: multiple of 128, no larger than the 128-padded problem.
    tm = int(min(tm, 128 * pl.cdiv(M, 128)))
    m_pad = int(tm * pl.cdiv(M, tm))
    if m_pad != M:
        patches_t = jnp.pad(patches_t, ((0, 0), (0, m_pad - M)))

    # Fold conv bias + BatchNorm (inference stats) into weights / one bias.
    #   y = ((W x + b) - mean) * gamma / sqrt(var + eps) + beta
    #     = (W * s) x + ((b - mean) * s + beta),   s = gamma * rsqrt(var + eps)
    scale = (gamma.astype(jnp.float32)
             * jax.lax.rsqrt(run_var.astype(jnp.float32) + BN_EPS))
    w_fused = (w.reshape(cout, cin * KH * KW).astype(jnp.float32)
               * scale[:, None]).astype(jnp.bfloat16)
    bias_fused = ((b.astype(jnp.float32) - run_mean.astype(jnp.float32)) * scale
                  + beta.astype(jnp.float32)).reshape(cout, 1)

    out = pl.pallas_call(
        down_kernel,
        out_shape=jax.ShapeDtypeStruct((cout, m_pad), jnp.float32),
        grid_spec=pltpu.PrefetchScalarGridSpec(
            num_scalar_prefetch=0,
            grid=(m_pad // tm,),
            in_specs=[
                pl.BlockSpec((K, tm), lambda i: (0, i)),      # patches tile (bf16)
                pl.BlockSpec((cout, K), lambda i: (0, 0)),    # fused weights (resident)
                pl.BlockSpec((cout, 1), lambda i: (0, 0)),    # fused bias (f32)
            ],
            out_specs=pl.BlockSpec((cout, tm), lambda i: (0, i)),
        ),
        compiler_params=pltpu.CompilerParams(
            dimension_semantics=("parallel",)),
    )(patches_t, w_fused, bias_fused)

    # (Cout, M) -> (Cout, N, Ho, Wo) -> NCHW
    return out[:, :M].reshape(cout, n, ho, wo).transpose(1, 0, 2, 3)


def _reference(x, params):
    """Pure-JAX f32 reference (eval-mode Down.forward) for a sanity check."""
    w, b, gamma, beta, run_mean, run_var = params
    y = jax.lax.conv_general_dilated(
        x.astype(jnp.float32), w.astype(jnp.float32),
        window_strides=(STRIDE, STRIDE), padding=((PAD, PAD), (PAD, PAD)),
        dimension_numbers=("NCHW", "OIHW", "NCHW"))
    y = y + b[None, :, None, None]
    y = (y - run_mean[None, :, None, None]) * jax.lax.rsqrt(
        run_var[None, :, None, None] + BN_EPS) * gamma[None, :, None, None] \
        + beta[None, :, None, None]
    return jnp.where(y > 0, y, LEAKY_SLOPE * y)


if __name__ == "__main__":
    key = jax.random.PRNGKey(0)
    k_x, k_w, k_b = jax.random.split(key, 3)

    N, C_IN, C_OUT, H, W = 2, 4, 8, 16, 16
    x = jax.random.normal(k_x, (N, C_IN, H, W), dtype=jnp.float32)

    # Deterministic params (shapes from Down(in_channels=4, out_channels=8)).
    fan_in = C_IN * KH * KW
    conv_w = jax.random.normal(k_w, (C_OUT, C_IN, KH, KW), jnp.float32) / jnp.sqrt(fan_in)
    conv_b = jax.random.normal(k_b, (C_OUT,), jnp.float32) * 0.1
    gamma = jnp.ones((C_OUT,), jnp.float32)
    beta = jnp.zeros((C_OUT,), jnp.float32)
    run_mean = jnp.zeros((C_OUT,), jnp.float32)
    run_var = jnp.ones((C_OUT,), jnp.float32)
    params = (conv_w, conv_b, gamma, beta, run_mean, run_var)

    y = jax.block_until_ready(down_forward(x, params))
    y_ref = jax.block_until_ready(_reference(x, params))

    # bf16 patches/weights with f32 accumulation: tolerance sized for bf16
    # input quantization (K=36 reduction -> ~1e-3 rms, ~1e-2 worst-case error).
    np.testing.assert_allclose(np.asarray(y), np.asarray(y_ref), rtol=2e-2, atol=2e-2)
    assert y.shape == (N, C_OUT, H // 2, W // 2)

    print("KERNEL_OK")
</pallas_src>

<mosaic_0001>
module attributes {stable_mosaic.version = 11 : i64} {
  func.func @down_kernel(%arg0: i32, %arg1: memref<36x128xbf16, #tpu.memory_space<vmem>>, %arg2: memref<8x36xbf16, #tpu.memory_space<vmem>>, %arg3: memref<8x1xf32, #tpu.memory_space<vmem>>, %arg4: memref<8x128xf32, #tpu.memory_space<vmem>>) attributes {dimension_semantics = [#tpu.dimension_semantics<parallel>], iteration_bounds = array<i64: 1>, scalar_prefetch = 0 : i64, scratch_operands = 0 : i64, tpu.core_type = #tpu.core_type<tc>, window_params = [{transform_indices = @transform_0, window_bounds = array<i64: 36, 128>}, {pipeline_mode = #tpu.pipeline_mode<synchronous>, transform_indices = @transform_1, window_bounds = array<i64: 8, 36>}, {pipeline_mode = #tpu.pipeline_mode<synchronous>, transform_indices = @transform_2, window_bounds = array<i64: 8, 1>}, {transform_indices = @transform_3, window_bounds = array<i64: 8, 128>}]} {
    %c0 = arith.constant 0 : index
    %c0_0 = arith.constant 0 : index
    %0 = vector.load %arg2[%c0, %c0_0] : memref<8x36xbf16, #tpu.memory_space<vmem>>, vector<8x36xbf16>
    %c0_1 = arith.constant 0 : index
    %c0_2 = arith.constant 0 : index
    %1 = vector.load %arg1[%c0_1, %c0_2] : memref<36x128xbf16, #tpu.memory_space<vmem>>, vector<36x128xbf16>
    %cst = arith.constant dense<0.000000e+00> : vector<8x128xf32>
    %2 = tpu.matmul %0, %1, %cst {dimension_numbers = #tpu.dot_dimension_numbers<[1], [0], [0], [1], [0, 0, 1, 1], [], []>} : vector<8x36xbf16>, vector<36x128xbf16>, vector<8x128xf32> -> vector<8x128xf32>
    %c0_3 = arith.constant 0 : index
    %c0_4 = arith.constant 0 : index
    %3 = vector.load %arg3[%c0_3, %c0_4] : memref<8x1xf32, #tpu.memory_space<vmem>>, vector<8x1xf32>
    %4 = vector.broadcast %3 : vector<8x1xf32> to vector<8x128xf32>
    %5 = arith.addf %2, %4 : vector<8x128xf32>
    %cst_5 = arith.constant 0.000000e+00 : f32
    %6 = vector.broadcast %cst_5 : f32 to vector<8x128xf32>
    %7 = arith.cmpf ogt, %5, %6 : vector<8x128xf32>
    %cst_6 = arith.constant 2.000000e-01 : f32
    %8 = vector.broadcast %cst_6 : f32 to vector<8x128xf32>
    %9 = arith.mulf %8, %5 : vector<8x128xf32>
    %10 = arith.select %7, %5, %9 : vector<8x128xi1>, vector<8x128xf32>
    %c0_7 = arith.constant 0 : index
    %c0_8 = arith.constant 0 : index
    %11 = vector.load %arg4[%c0_7, %c0_8] : memref<8x128xf32, #tpu.memory_space<vmem>>, vector<8x128xf32>
    tpu.vector_store %arg4[%c0_7, %c0_8], %10 {strides = array<i32>} : memref<8x128xf32, #tpu.memory_space<vmem>>, vector<8x128xf32>,
    return
  }
  func.func @transform_0(%arg0: i32) -> (i32, i32) {
    %c0_i32 = arith.constant 0 : i32
    %c0_i32_0 = arith.constant 0 : i32
    return %c0_i32, %arg0 : i32, i32
  }
  func.func @transform_1(%arg0: i32) -> (i32, i32) {
    %c0_i32 = arith.constant 0 : i32
    %c0_i32_0 = arith.constant 0 : i32
    %c0_i32_1 = arith.constant 0 : i32
    return %c0_i32, %c0_i32_0 : i32, i32
  }
  func.func @transform_2(%arg0: i32) -> (i32, i32) {
    %c0_i32 = arith.constant 0 : i32
    %c0_i32_0 = arith.constant 0 : i32
    %c0_i32_1 = arith.constant 0 : i32
    return %c0_i32, %c0_i32_0 : i32, i32
  }
  func.func @transform_3(%arg0: i32) -> (i32, i32) {
    %c0_i32 = arith.constant 0 : i32
    %c0_i32_0 = arith.constant 0 : i32
    return %c0_i32, %arg0 : i32, i32
  }
}

</mosaic_0001>

<bundles_post_ra>
// kernel: tpu_custom_call.1
= control target key start
LH: loop header
LB: loop body
LE: loop exit
PB: predicated region body
PF: predicated region fallthrough
CT: control target
= control target key end

     0   :  { %8 = vsyncpa [#allocation3], 0  ;;  %s207_s0 = inlined_call_operand.hbm [shape: bf16[36,128], index: 0, kind: input, shape index: {}]   ;;  %s208_s1 = inlined_call_operand.vmem [shape: bf16[8,36], index: 1, kind: input, shape index: {}]   ;;  %s209_s2 = inlined_call_operand.vmem [shape: f32[8,1], index: 2, kind: input, shape index: {}]   ;;  %s210_s3 = inlined_call_operand.hbm [shape: f32[8,128], index: 3, kind: output, shape index: {}]  }
   0x1   :  { %9 = vsyncpa [#allocation4], 0  ;;  %s14_s14 = sshll.u32 %s207_s0, 4  ;;  %s170_s15 = smov [#allocation2]   ;;  %s15_s14 = int_to_ptr.hbm [resolvable:$true] %s14_s14 }
   0x2   :  { %s16_s16 = sshll.u32 %s170_s15, 4  ;;  %s171_s17 = smov 64   ;;  %s17_s16 = int_to_ptr.vmem [resolvable:$true] %s16_s16 }
   0x3   :  { %s172_s18 = smov 4  }
   0x4   :  { %22 = dma.hbm_to_vmem [thread:$0]  %s15_s14, 320, %s17_s16, [#allocation3], %s171_s17, %s171_s17, %s172_s18  }
   0x5   :  { %166 = dma.done.wait [#allocation3], 320  }
   0x6   :  { %167 = vsyncadd [#allocation3], 4294966976  ;;  %v173_v0 = vmov 0   ;;  %v37_v1 = vld [vmem:[#allocation2 + $0x10] sm:$0x3]  ;;  %v38_v3 = vld [vmem:[%s209_s2] sm:$0xff] }
   0x7   :  { %117 = vset.pattern.permute.xlu0 %v173_v0  ;;  %v53_v2 = vunpack.c.l.b16 %v37_v1  ;;  %vm63_vm0 = vcmask 1041408   ;;  %v111_v6 = vld [vmem:[#allocation2 + $0x8] sm:$0xff]  ;;  %v110_v7 = vld [vmem:[#allocation2] sm:$0xff]  ;;  %vm59_vm1 = vcmask 293888   ;;  %s174_s22 = smov [#allocation5]   ;;  %s91_s25 = sshll.u32 %s210_s3, 4  ;;  %s92_s25 = int_to_ptr.hbm [resolvable:$true] %s91_s25 }
   0x8   :  { %41 = vperm.xlu0 %117, %v38_v3   ;;  %v32_v8 = vld [vmem:[%s208_s1] sm:$0xf]  ;;  %s89_s2 = sshll.u32 %s174_s22, 4  ;;  %s90_s2 = int_to_ptr.vmem [resolvable:$true] %s89_s2 }
   0x9   :  { %v56_v4 = vpack.c.b16 %v53_v2, %v53_v2 }
   0xb   :  { %v65_v5 = vsel %vm63_vm0, %v56_v4, 0 }
   0xc   :  { %72 = vmatpush.bf16.msra.mxu0 %v65_v5 }
  0x10   :  { %73 = vmatpush.bf16.msra.mxu0 %v111_v6 }
  0x14   :  { %74 = vmatpush.bf16.msra.mxu0 %v110_v7 }
  0x17   :  { %109 = vmatmul.msk.bf16.vlgmr.msra.gmra.mxu0 %vm59_vm1, %v32_v8 }
  0x7a   :  { %v42_v9 = vpop.permute.xlu0 %41 }
  0x94   :  { %v76_v10 = vpop.f32.mrf.mxu0 }
  0x95   :  { %v77_v11 = vadd.f32 %v76_v10, %v42_v9 }
  0x97   :  { %vm80_vm2 = vcmp.gt.f32.partialorder %v77_v11, 0.0  ;;  %v81_v12 = vmul.f32 0.2, %v77_v11 }
  0x99   :  { %v82_v13 = vsel %vm80_vm2, %v77_v11, %v81_v12 }
  0x9a   :  { %83 = vst [vmem:[#allocation5] sm:$0xff] %v82_v13 }
  0x9b   :  { %94 = dma.vmem_to_hbm [thread:$0]  %s90_s2, 128, %s92_s25, [#allocation4]  }
  0x9c   :  { %v78_v14 = vpop.f32.mrf.mxu0 }
  0x9d   :  { %168 = dma.done.wait [#allocation4], 128  }
  0x9e   :  { %169 = vsyncadd [#allocation4], 4294967168 }
  0x9f   :  { %99 = vsyncpa [#allocation3], 1 }
  0xa0   :  { %100 = vsyncpa [#allocation4], 1 }

</bundles_post_ra>
